<compile_context>
chip_gen: v7x
topology: tpu7x:2x2x1
jax: 0.10.0
libtpu: 0.0.40
codegen_flags: <defaults>
</compile_context>

<pallas_src>
import functools

import jax
import jax.numpy as jnp
from jax.experimental import pallas as pl
from jax.experimental.pallas import tpu as pltpu

DIM_INNER = 64          # cfg['gnn']['dim_inner'] (== dim_edge)
NODE_NUM_TYPES = 21     # cfg['dataset']['node_encoder_num_types']
EDGE_NUM_TYPES = 4      # cfg['dataset']['edge_encoder_num_types']
MAX_TILE_ROWS = 4096    # rows per stream per grid step (well under VMEM limits)


def _round_up(x, m):
    return ((x + m - 1) // m) * m


def _encoder_kernel(nidx_ref, eidx_ref, ntab_ref, etab_ref, nout_ref, eout_ref):
    """Gather one node tile and one edge tile via one-hot matmuls on the MXU.

    nidx_ref: (tile_n, 1) int32     ntab_ref: (Tn_pad, D) f32
    eidx_ref: (tile_e, 1) int32     etab_ref: (Te_pad, D) f32
    nout_ref: (tile_n, D) f32       eout_ref: (tile_e, D) f32
    """
    # Node gather: exact one-hot (tile_n, Tn) @ (Tn, D).
    nidx = nidx_ref[...]
    n_iota = jax.lax.broadcasted_iota(
        jnp.int32, (nidx.shape[0], ntab_ref.shape[0]), 1)
    n_onehot = (nidx == n_iota).astype(jnp.float32)
    nout_ref[...] = jnp.dot(n_onehot, ntab_ref[...],
                            preferred_element_type=jnp.float32)

    # Edge gather: exact one-hot (tile_e, Te) @ (Te, D).
    eidx = eidx_ref[...]
    e_iota = jax.lax.broadcasted_iota(
        jnp.int32, (eidx.shape[0], etab_ref.shape[0]), 1)
    e_onehot = (eidx == e_iota).astype(jnp.float32)
    eout_ref[...] = jnp.dot(e_onehot, etab_ref[...],
                            preferred_element_type=jnp.float32)


@functools.partial(jax.jit, static_argnames=("max_tile",))
def fused_embedding_lookup(node_idx, edge_idx, node_table_pad, edge_table_pad,
                           *, max_tile=MAX_TILE_ROWS):
    """node_idx: (N,) int; edge_idx: (E,) int -> ((N, D), (E, D)) f32."""
    n = node_idx.shape[0]
    e = edge_idx.shape[0]
    d = node_table_pad.shape[1]
    tn_pad = node_table_pad.shape[0]
    te_pad = edge_table_pad.shape[0]

    # Balanced grid: same (even, >=2) number of steps for both streams.
    steps = max(pl.cdiv(n, max_tile), pl.cdiv(e, max_tile), 2)
    steps += steps % 2
    tile_n = _round_up(pl.cdiv(n, steps), 8)
    tile_e = _round_up(pl.cdiv(e, steps), 8)

    # Clamp block indices so a stream that finishes early just re-writes its
    # last (partial) block with identical data instead of going fully OOB.
    last_n_blk = pl.cdiv(n, tile_n) - 1
    last_e_blk = pl.cdiv(e, tile_e) - 1

    nidx = node_idx.astype(jnp.int32).reshape(n, 1)
    eidx = edge_idx.astype(jnp.int32).reshape(e, 1)

    flops = 2 * (n * tn_pad + e * te_pad) * d
    bytes_accessed = (n + e) * (d * 4 + 4) + (tn_pad + te_pad) * d * 4

    return pl.pallas_call(
        _encoder_kernel,
        out_shape=(jax.ShapeDtypeStruct((n, d), jnp.float32),
                   jax.ShapeDtypeStruct((e, d), jnp.float32)),
        grid_spec=pltpu.PrefetchScalarGridSpec(
            num_scalar_prefetch=0,
            grid=(steps,),
            in_specs=[
                pl.BlockSpec((tile_n, 1),
                             lambda i, _b=last_n_blk: (jnp.minimum(i, _b), 0)),
                pl.BlockSpec((tile_e, 1),
                             lambda i, _b=last_e_blk: (jnp.minimum(i, _b), 0)),
                pl.BlockSpec((tn_pad, d), lambda i: (0, 0)),   # resident table
                pl.BlockSpec((te_pad, d), lambda i: (0, 0)),   # resident table
            ],
            out_specs=(
                pl.BlockSpec((tile_n, d),
                             lambda i, _b=last_n_blk: (jnp.minimum(i, _b), 0)),
                pl.BlockSpec((tile_e, d),
                             lambda i, _b=last_e_blk: (jnp.minimum(i, _b), 0)),
            ),
        ),
        compiler_params=pltpu.CompilerParams(
            dimension_semantics=("parallel",),
            vmem_limit_bytes=32 * 1024 * 1024),
        cost_estimate=pl.CostEstimate(
            flops=flops, transcendentals=0, bytes_accessed=bytes_accessed),
    )(nidx, eidx, node_table_pad, edge_table_pad)


class FeatureEncoderPallas:
    """JAX/Pallas re-implementation of FeatureEncoder's forward pass."""

    def __init__(self, key):
        k_node, k_edge = jax.random.split(key)
        # torch.nn.Embedding default init ~ N(0, 1); deterministic synthetic init.
        self.node_table = jax.random.normal(
            k_node, (NODE_NUM_TYPES, DIM_INNER), jnp.float32)
        self.edge_table = jax.random.normal(
            k_edge, (EDGE_NUM_TYPES, DIM_INNER), jnp.float32)
        # Pad tables once to sublane multiples (zero rows are never indexed).
        self.node_table_pad = jnp.zeros(
            (_round_up(NODE_NUM_TYPES, 8), DIM_INNER),
            jnp.float32).at[:NODE_NUM_TYPES].set(self.node_table)
        self.edge_table_pad = jnp.zeros(
            (_round_up(EDGE_NUM_TYPES, 8), DIM_INNER),
            jnp.float32).at[:EDGE_NUM_TYPES].set(self.edge_table)

    def __call__(self, batch):
        # TODO(synk): bucket/pad (N, E) to a few fixed sizes upstream to avoid
        # a recompile per distinct graph-batch shape.
        x_emb, e_emb = fused_embedding_lookup(
            batch["x"][:, 0], batch["edge_attr"],
            self.node_table_pad, self.edge_table_pad)
        out = dict(batch)
        out["x"] = x_emb
        out["edge_attr"] = e_emb
        return out


if __name__ == "__main__":
    key = jax.random.PRNGKey(0)
    k_params, k_x, k_e, k_x2, k_e2 = jax.random.split(key, 5)

    encoder = FeatureEncoderPallas(k_params)

    # Small case (odd sizes, partial last tiles).
    num_nodes, num_edges = 10, 14
    batch = {
        "x": jax.random.randint(k_x, (num_nodes, 1), 0, NODE_NUM_TYPES, jnp.int32),
        "edge_attr": jax.random.randint(
            k_e, (num_edges,), 0, EDGE_NUM_TYPES, jnp.int32),
        "edge_index": jnp.zeros((2, num_edges), jnp.int32),  # passthrough glue
    }
    out = encoder(batch)
    jax.block_until_ready(out["x"])
    jax.block_until_ready(out["edge_attr"])

    ref_x = jnp.take(encoder.node_table, batch["x"][:, 0], axis=0)
    ref_e = jnp.take(encoder.edge_table, batch["edge_attr"], axis=0)
    assert out["x"].shape == (num_nodes, DIM_INNER)
    assert out["edge_attr"].shape == (num_edges, DIM_INNER)
    assert jnp.allclose(out["x"], ref_x, atol=1e-6)
    assert jnp.allclose(out["edge_attr"], ref_e, atol=1e-6)

    # Larger case (two balanced grid steps, uneven sizes).
    n2, e2 = 1000, 2200
    batch2 = {
        "x": jax.random.randint(k_x2, (n2, 1), 0, NODE_NUM_TYPES, jnp.int32),
        "edge_attr": jax.random.randint(k_e2, (e2,), 0, EDGE_NUM_TYPES, jnp.int32),
        "edge_index": jnp.zeros((2, e2), jnp.int32),
    }
    out2 = encoder(batch2)
    jax.block_until_ready(out2["x"])
    ref_x2 = jnp.take(encoder.node_table, batch2["x"][:, 0], axis=0)
    ref_e2 = jnp.take(encoder.edge_table, batch2["edge_attr"], axis=0)
    assert jnp.allclose(out2["x"], ref_x2, atol=1e-6)
    assert jnp.allclose(out2["edge_attr"], ref_e2, atol=1e-6)

    # Multi-step grid with a small forced tile: exercises many steps, partial
    # last blocks, and the clamped "stream finished early" path.
    out3_x, out3_e = fused_embedding_lookup(
        batch2["x"][:, 0], batch2["edge_attr"],
        encoder.node_table_pad, encoder.edge_table_pad, max_tile=64)
    jax.block_until_ready(out3_x)
    assert jnp.allclose(out3_x, ref_x2, atol=1e-6)
    assert jnp.allclose(out3_e, ref_e2, atol=1e-6)

    print("KERNEL_OK")
</pallas_src>

<mosaic_0001>
module attributes {stable_mosaic.version = 11 : i64} {
  func.func @_encoder_kernel(%arg0: i32, %arg1: memref<8x1xi32, #tpu.memory_space<vmem>>, %arg2: memref<8x1xi32, #tpu.memory_space<vmem>>, %arg3: memref<24x64xf32, #tpu.memory_space<vmem>>, %arg4: memref<8x64xf32, #tpu.memory_space<vmem>>, %arg5: memref<8x64xf32, #tpu.memory_space<vmem>>, %arg6: memref<8x64xf32, #tpu.memory_space<vmem>>) attributes {dimension_semantics = [#tpu.dimension_semantics<parallel>], iteration_bounds = array<i64: 2>, scalar_prefetch = 0 : i64, scratch_operands = 0 : i64, tpu.core_type = #tpu.core_type<tc>, window_params = [{transform_indices = @transform_0, window_bounds = array<i64: 8, 1>}, {transform_indices = @transform_1, window_bounds = array<i64: 8, 1>}, {pipeline_mode = #tpu.pipeline_mode<synchronous>, transform_indices = @transform_2, window_bounds = array<i64: 24, 64>}, {pipeline_mode = #tpu.pipeline_mode<synchronous>, transform_indices = @transform_3, window_bounds = array<i64: 8, 64>}, {transform_indices = @transform_4, window_bounds = array<i64: 8, 64>}, {transform_indices = @transform_5, window_bounds = array<i64: 8, 64>}]} {
    %c0 = arith.constant 0 : index
    %c0_0 = arith.constant 0 : index
    %0 = vector.load %arg1[%c0, %c0_0] : memref<8x1xi32, #tpu.memory_space<vmem>>, vector<8x1xi32>
    %1 = tpu.iota {dimensions = array<i32: 1>} : vector<8x24xi32>
    %2 = vector.broadcast %0 : vector<8x1xi32> to vector<8x24xi32>
    %3 = arith.cmpi eq, %2, %1 : vector<8x24xi32>
    %4 = arith.extui %3 : vector<8x24xi1> to vector<8x24xi32>
    %5 = arith.sitofp %4 : vector<8x24xi32> to vector<8x24xf32>
    %c0_1 = arith.constant 0 : index
    %c0_2 = arith.constant 0 : index
    %6 = vector.load %arg3[%c0_1, %c0_2] : memref<24x64xf32, #tpu.memory_space<vmem>>, vector<24x64xf32>
    %cst = arith.constant dense<0.000000e+00> : vector<8x64xf32>
    %7 = tpu.matmul %5, %6, %cst {dimension_numbers = #tpu.dot_dimension_numbers<[1], [0], [0], [1], [0, 0, 1, 1], [], []>} : vector<8x24xf32>, vector<24x64xf32>, vector<8x64xf32> -> vector<8x64xf32>
    %c0_3 = arith.constant 0 : index
    %c0_4 = arith.constant 0 : index
    %8 = vector.load %arg5[%c0_3, %c0_4] : memref<8x64xf32, #tpu.memory_space<vmem>>, vector<8x64xf32>
    tpu.vector_store %arg5[%c0_3, %c0_4], %7 {strides = array<i32>} : memref<8x64xf32, #tpu.memory_space<vmem>>, vector<8x64xf32>,
    %c0_5 = arith.constant 0 : index
    %c0_6 = arith.constant 0 : index
    %9 = vector.load %arg2[%c0_5, %c0_6] : memref<8x1xi32, #tpu.memory_space<vmem>>, vector<8x1xi32>
    %10 = tpu.iota {dimensions = array<i32: 1>} : vector<8x8xi32>
    %11 = vector.broadcast %9 : vector<8x1xi32> to vector<8x8xi32>
    %12 = arith.cmpi eq, %11, %10 : vector<8x8xi32>
    %13 = arith.extui %12 : vector<8x8xi1> to vector<8x8xi32>
    %14 = arith.sitofp %13 : vector<8x8xi32> to vector<8x8xf32>
    %c0_7 = arith.constant 0 : index
    %c0_8 = arith.constant 0 : index
    %15 = vector.load %arg4[%c0_7, %c0_8] : memref<8x64xf32, #tpu.memory_space<vmem>>, vector<8x64xf32>
    %cst_9 = arith.constant dense<0.000000e+00> : vector<8x64xf32>
    %16 = tpu.matmul %14, %15, %cst_9 {dimension_numbers = #tpu.dot_dimension_numbers<[1], [0], [0], [1], [0, 0, 1, 1], [], []>} : vector<8x8xf32>, vector<8x64xf32>, vector<8x64xf32> -> vector<8x64xf32>
    %c0_10 = arith.constant 0 : index
    %c0_11 = arith.constant 0 : index
    %17 = vector.load %arg6[%c0_10, %c0_11] : memref<8x64xf32, #tpu.memory_space<vmem>>, vector<8x64xf32>
    tpu.vector_store %arg6[%c0_10, %c0_11], %16 {strides = array<i32>} : memref<8x64xf32, #tpu.memory_space<vmem>>, vector<8x64xf32>,
    return
  }
  func.func @transform_0(%arg0: i32) -> (i32, i32) {
    %c1_i32 = arith.constant 1 : i32
    %0 = arith.minsi %arg0, %c1_i32 : i32
    %c0_i32 = arith.constant 0 : i32
    %c0_i32_0 = arith.constant 0 : i32
    return %0, %c0_i32 : i32, i32
  }
  func.func @transform_1(%arg0: i32) -> (i32, i32) {
    %c1_i32 = arith.constant 1 : i32
    %0 = arith.minsi %arg0, %c1_i32 : i32
    %c0_i32 = arith.constant 0 : i32
    %c0_i32_0 = arith.constant 0 : i32
    return %0, %c0_i32 : i32, i32
  }
  func.func @transform_2(%arg0: i32) -> (i32, i32) {
    %c0_i32 = arith.constant 0 : i32
    %c0_i32_0 = arith.constant 0 : i32
    %c0_i32_1 = arith.constant 0 : i32
    return %c0_i32, %c0_i32_0 : i32, i32
  }
  func.func @transform_3(%arg0: i32) -> (i32, i32) {
    %c0_i32 = arith.constant 0 : i32
    %c0_i32_0 = arith.constant 0 : i32
    %c0_i32_1 = arith.constant 0 : i32
    return %c0_i32, %c0_i32_0 : i32, i32
  }
  func.func @transform_4(%arg0: i32) -> (i32, i32) {
    %c1_i32 = arith.constant 1 : i32
    %0 = arith.minsi %arg0, %c1_i32 : i32
    %c0_i32 = arith.constant 0 : i32
    %c0_i32_0 = arith.constant 0 : i32
    return %0, %c0_i32 : i32, i32
  }
  func.func @transform_5(%arg0: i32) -> (i32, i32) {
    %c1_i32 = arith.constant 1 : i32
    %0 = arith.minsi %arg0, %c1_i32 : i32
    %c0_i32 = arith.constant 0 : i32
    %c0_i32_0 = arith.constant 0 : i32
    return %0, %c0_i32 : i32, i32
  }
}

</mosaic_0001>

<bundles_post_ra>
// kernel: fused_embedding_lookup.1
= control target key start
LH: loop header
LB: loop body
LE: loop exit
PB: predicated region body
PF: predicated region fallthrough
CT: control target
= control target key end

     0   :  { %11 = vsyncpa [#allocation3], 0  ;;  %s991_s0 = inlined_call_operand.vmem [shape: s32[10,1], index: 0, kind: input, shape index: {}]   ;;  %s992_s1 = inlined_call_operand.vmem [shape: s32[14,1], index: 1, kind: input, shape index: {}]   ;;  %s993_s2 = inlined_call_operand.vmem [shape: f32[24,64], index: 2, kind: input, shape index: {}]   ;;  %s994_s3 = inlined_call_operand.vmem [shape: f32[8,64], index: 3, kind: input, shape index: {}]   ;;  %s995_s4 = inlined_call_operand.hbm [shape: f32[10,64], index: 4, kind: output, shape index: {0}]   ;;  %s996_s5 = inlined_call_operand.hbm [shape: f32[14,64], index: 5, kind: output, shape index: {1}]  }
   0x1   :  { %13 = vsyncpa [#allocation3 + $0x1], 0 }
   0x2   :  { %14 = vsyncpa [#allocation5], 0 }
   0x3   :  { %16 = vsyncpa [#allocation5 + $0x1], 0  ;;  %s826_s18 = smov 0   ;;  %s828_s19 = smov 0  }
   0x4   :  { %s830_s20 = smov 0   ;;  %s832_s21 = smov 0  }
   0x5 LB: > { %s847_s22 = sadd.s32 4294967295, %s788_s21   ;;  %s598_s23 = sadd.s32 4294967294, %s788_s21   ;;  %s788_s21 = sphi %s832_s21, %s1002_s21   ;;  %s784_s20 = sphi %s830_s20, %s1001_s20   ;;  %s780_s19 = sphi %s828_s19, %s1000_s19   ;;  %s776_s18 = sphi %s826_s18, %s999_s18  }
   0x6   : > { %s851_s24 = sadd.s32 1, %s788_s21   ;;  %p128_p0 = scmp.lt.s32.totalorder %s788_s21, 1 }
   0x7   : > { %p130_p1 = scmp.lt.s32.totalorder %s851_s24, 1  ;;  %s135_s25 = sadd.s32 1, %s784_s20 }
   0x8   : > { %s129_s26 = scalar_select %p128_p0, %s788_s21, 1 }
   0x9   : > { %s131_s27 = scalar_select %p130_p1, %s851_s24, 1 }
   0xa   : > { %p145_p2 = scmp.ne.s32.totalorder %s784_s20, %s780_s19  ;;  %p146_p3 = scmp.eq.s32.totalorder %s847_s22, 1 }
   0xb   : > { %s132_s28 = ssub.s32 %s129_s26, %s131_s27  ;;  %p151_p4 = scmp.ne.s32.totalorder %s780_s19, %s776_s18 }
   0xc   : > { %p133_p5 = scmp.eq.s32.totalorder %s132_s28, 0  ;;  %p863_p6 = por %p146_p3, %p145_p2 }
   0xd   : > { %p152_p7 = scmp.eq.s32.totalorder %s598_s23, 1  ;;  %p601_p8 = scmp.ge.s32.totalorder %s788_s21, 1 }
   0xe   : > { %s869_s30 = scalar_select %p133_p5, %s784_s20, %s135_s25  }
   0xf   : > { %p871_p9 = por %p152_p7, %p151_p4  ;;  %p228_p10 = scmp.lt.s32.totalorder %s788_s21, 3 }
  0x11   : > { %p229_p11 = pnand %p601_p8, %p228_p10 }
  0x12   : > { %p268_p12 = scmp.lt.s32.totalorder (!%p229_p11), %s847_s22, 1  ;;  %v297_v0 = vld [vmem:[%s993_s2] sm:$0xff] (!%p229_p11)  ;;  %v298_v1 = vld [vmem:[%s993_s2 + $0x8] sm:$0xff] (!%p229_p11)  ;;  %v790_v2 = vmov (!%p229_p11), 0   ;;  %v791_v3 = vmov (!%p229_p11), 0.0|0.0   ;;  %v792_v5 = vmov (!%p229_p11), 0.0   ;;  %v289_v10 = vlaneseq (!%p229_p11) }
  0x13   : > { %232 = sbr.rel (%p229_p11) target bundleno = 411 (0x19b), region = 36  ;;  %693 = vset.pattern.permute.xlu0 (!%p229_p11), %v790_v2  ;;  %642 = vmatprep.subr.bf16.mxu0 (!%p229_p11), %v791_v3  ;;  %v643_v4 = vpack.c.bf16 (!%p229_p11), %v298_v1, %v297_v0  ;;  %v299_v7 = vld [vmem:[%s993_s2 + $0x10] sm:$0xff] (!%p229_p11)  ;;  %vm793_vm0 = vmmov (!%p229_p11), 0   ;;  %v383_v9 = vld [vmem:[%s994_s3] sm:$0xff] (!%p229_p11)  ;;  %vm300_vm1 = vcmask (!%p229_p11), 195584   ;;  %vm384_vm3 = vcmask (!%p229_p11), 64512  }
  0x14   : > { %637 = vmatprep.subr.mxu1 (!%p229_p11), %v792_v5  ;;  %634 = vmatprep.mubr.msk.f32.mxu0 (!%p229_p11), %vm793_vm0, %v792_v5  ;;  %v290_v11 = vand.u32 (!%p229_p11), 127, %v289_v10  ;;  %s900_s7 = sand.u32 (!%p229_p11), 1, %s780_s19   ;;  %vm374_vm5 = vcmask (!%p229_p11), 523264   ;;  %s794_s25 = smov (!%p229_p11), [#allocation2]  }
  0x15   : > { %644 = vmatpush3.bf16.msra.mxu0 (!%p229_p11), %v643_v4  ;;  %639 = vmatprep.mubr.msk.f32.mxu1 (!%p229_p11), %vm793_vm0, %v792_v5  ;;  %s602_s8 = sshll.u32 (!%p229_p11), %s900_s7, 3  ;;  %s460_s17 = scalar_lea.sflag (!%p229_p11), [#allocation3], %s900_s7 }
  0x16   : > { %632 = vmatprep.subr.mxu0 (!%p229_p11), %v792_v5  ;;  %638 = vmatpush3.msra.mxu1 (!%p229_p11), %v383_v9  ;;  %s260_s10 = scalar_lea.vmem (!%p229_p11), [#allocation2], %s602_s8  ;;  %s698_s26 = sshll.u32 (!%p229_p11), %s794_s25, 4  ;;  %s699_s26 = int_to_ptr.vmem [resolvable:$false] %s698_s26 }
  0x17   : > { %s700_s27 = scalar_lea.vmem (!%p229_p11), %s699_s26, 256 }
  0x19   : > { %633 = vmatpush3.msra.mxu0 (!%p229_p11), %v299_v7 }
  0x1a   : > { %s1004_s22 = smov (!%p268_p12, %s847_s22), 1 }
  0x1b   : > { %s271_s11 = scalar_select %p268_p12, %s1004_s22, 1 }
  0x1c   : > { %s618_s9 = sshll.u32 %s1004_s22, 7 }
  0x1d   : > { %s607_s12 = sshll.u32 %s271_s11, 3  ;;  %s480_s11 = sshll.u32 %s260_s10, 4  ;;  %s911_s11 = int_to_ptr.vmem [resolvable:$true] %s480_s11 }
  0x1e   : > { %s273_s15 = scalar_lea.vmem %s991_s0, %s607_s12  ;;  %s281_s23 = scalar_lea.vmem %s992_s1, %s607_s12 }
  0x1f   : > { %v288_v6 = vld [vmem:[%s273_s15] sm:$0xff]  ;;  %s909_s14 = scalar_lea.hbm %s995_s4, %s618_s9  ;;  %s913_s15 = scalar_lea.vmem [#allocation4], %s602_s8 }
  0x20   : > { %292 = vperm.xlu0 %693, %v288_v6   ;;  %v376_v8 = vld [vmem:[%s281_s23] sm:$0xff]  ;;  %s495_s16 = sshll.u32 %s913_s15, 4  ;;  %s694_s23 = scalar_lea.vmem %s911_s11, 128  ;;  %s948_s16 = int_to_ptr.vmem [resolvable:$true] %s495_s16 }
  0x21   : > { %p695_p13 = scmp.ne.s32.totalorder %s911_s11, %s694_s23  ;;  %p701_p2 = scmp.lt.s32.totalorder %s911_s11, %s699_s26 }
  0x22   : > { %p702_p3 = scmp.lt.s32.totalorder %s700_s27, %s694_s23 }
  0x23   : > { %p696_p0 = pnand %p695_p13, %p863_p6 }
  0x24   : > { %378 = vperm.xlu0 %693, %v376_v8   ;;  %p703_p4 = por %p702_p3, %p701_p2 }
  0x25   : > { %p697_p1 = pneg %p696_p0 }
  0x27   : > { %p704_p5 = pnand %p703_p4, %p697_p1 }
  0x9f   : > { %v293_v12 = vpop.permute.xlu0 %292 }
  0xa0   : > { %vm294_vm2 = vcmp.eq.s32.totalorder %v293_v12, %v290_v11 }
  0xa1   : > { %v612_v13 = vsel %vm294_vm2, 1.0, %v792_v5 }
  0xa2   : > { %635 = vmatmul.mubr.msk.f32.vlgmr.msra.gmra.mrb[0].mxu0 %vm300_vm1, %v612_v13 }
  0xa3   : > { %v379_v14 = vpop.permute.xlu0 %378 }
  0xa4   : > { %vm380_vm4 = vcmp.eq.s32.totalorder %v379_v14, %v290_v11 }
  0xa5   : > { %v614_v15 = vsel %vm380_vm4, 1.0, %v792_v5 }
  0xa6   : > { %640 = vmatmul.mubr.msk.f32.vlgmr.msra.gmra.mrb[0].mxu1 %vm384_vm3, %v614_v15 }
 0x175   : > { %v370_v16 = vpop.f32.mrb[0].mxu0 }
 0x176   : > { %375 = vst.msk [vmem:[%s260_s10] sm:$0xff] %vm374_vm5, %v370_v16  ;;  %v636_v17 = vpop.f32.mrb[1].mxu0 }
 0x177   : > { %707 = shalt.err (!%p704_p5)
}
 0x178   : > { %s708_s28 = scalar_lea.hbm %s909_s14, 128  ;;  %s712_s12 = scalar_lea.hbm %s995_s4, 256 }
 0x179   : > { %p709_p7 = scmp.ne.s32.totalorder %s909_s14, %s708_s28  ;;  %p713_p11 = scmp.lt.u32.totalorder %s909_s14, %s995_s4 }
 0x17a   : > { %p714_p12 = scmp.lt.u32.totalorder %s712_s12, %s708_s28  ;;  %p716_p0 = scmp.lt.u32.totalorder %s708_s28, %s909_s14 }
 0x17b   : > { %p710_p8 = pnand %p709_p7, %p863_p6 }
 0x17c   : > { %p715_p13 = por %p714_p12, %p713_p11 }
 0x17d   : > { %p711_p10 = pneg %p710_p8 }
 0x17e   : > { %p717_p1 = por %p716_p0, %p715_p13 }
 0x180   : > { %p718_p2 = pnand %p717_p1, %p711_p10 }
 0x182   : > { %721 = shalt.err (!%p718_p2)
}
 0x183   : > { %645 = dma.vmem_to_hbm [thread:$0]  (%p863_p6), %s911_s11, 128, %s909_s14, %s460_s17   ;;  %v454_v18 = vpop.f32.mrb[0].mxu1 }
 0x184   : > { %s944_s27 = scalar_lea.hbm %s996_s5, %s618_s9  ;;  %458 = vst.msk [vmem:[%s913_s15] sm:$0xff] %vm374_vm5, %v454_v18  ;;  %v641_v19 = vpop.f32.mrb[1].mxu1  ;;  %s465_s28 = scalar_lea.sflag [#allocation5], %s900_s7 }
 0x185   : > { %s722_s8 = scalar_lea.vmem %s948_s16, 128  ;;  %s795_s22 = smov [#allocation4]  }
 0x186   : > { %p723_p3 = scmp.ne.s32.totalorder %s948_s16, %s722_s8  ;;  %s726_s11 = sshll.u32 %s795_s22, 4  ;;  %s727_s11 = int_to_ptr.vmem [resolvable:$false] %s726_s11 }
 0x187   : > { %s728_s9 = scalar_lea.vmem %s727_s11, 256  ;;  %p729_p7 = scmp.lt.s32.totalorder %s948_s16, %s727_s11 }
 0x188   : > { %p724_p4 = pnand %p723_p3, %p863_p6  ;;  %p730_p8 = scmp.lt.s32.totalorder %s728_s9, %s722_s8 }
 0x18a   : > { %p725_p5 = pneg %p724_p4  ;;  %p731_p10 = por %p730_p8, %p729_p7 }
 0x18c   : > { %p732_p11 = pnand %p731_p10, %p725_p5 }
 0x18e   : > { %735 = shalt.err (!%p732_p11)
}
 0x18f   : > { %s736_s7 = scalar_lea.hbm %s944_s27, 128  ;;  %s740_s17 = scalar_lea.hbm %s996_s5, 256 }
 0x190   : > { %p737_p12 = scmp.ne.s32.totalorder %s944_s27, %s736_s7  ;;  %p741_p1 = scmp.lt.u32.totalorder %s944_s27, %s996_s5 }
 0x191   : > { %p742_p2 = scmp.lt.u32.totalorder %s740_s17, %s736_s7  ;;  %p744_p4 = scmp.lt.u32.totalorder %s736_s7, %s944_s27 }
 0x192   : > { %p738_p13 = pnand %p737_p12, %p863_p6 }
 0x193   : > { %p743_p3 = por %p742_p2, %p741_p1 }
 0x194   : > { %p739_p0 = pneg %p738_p13 }
 0x195   : > { %p745_p5 = por %p744_p4, %p743_p3 }
 0x197   : > { %p746_p7 = pnand %p745_p5, %p739_p0 }
 0x199   : > { %749 = shalt.err (!%p746_p7)
}
 0x19a   : > { %646 = dma.vmem_to_hbm [thread:$0]  (%p863_p6), %s948_s16, 128, %s944_s27, %s465_s28  }
 0x19b PF: > { %p656_p8 = scmp.ge.s32.totalorder %s788_s21, 2  ;;  %s507_s13 = sand.u32 1, %s776_s18  }
 0x19c   : > { %s508_s25 = scalar_lea.sflag [#allocation3], %s507_s13 }
 0x19d   : > { %p650_p10 = pnand %p656_p8, %p871_p9 }
 0x19f   : > { %767 = dma.done.wait (!%p650_p10), %s508_s25, 128  }
 0x1a0   : > { %769 = vsyncadd (!%p650_p10), %s508_s25, 4294967168  ;;  %s517_s23 = scalar_lea.sflag [#allocation5], %s507_s13 }
 0x1a1   : > { %771 = dma.done.wait (!%p650_p10), %s517_s23, 128  }
 0x1a2   : > { %773 = vsyncadd (!%p650_p10), %s517_s23, 4294967168  ;;  %p19_p6 = scmp.ge.s32.totalorder %s851_s24, 4   ;;  %s999_s18 = smov %s780_s19 }
 0x1a3   : > { %s1000_s19 = smov %s784_s20  ;;  %s1001_s20 = smov %s869_s30 }
 0x1a4   : > { %s1002_s21 = smov %s851_s24  ;;  %21 = sbr.rel (!%p19_p6) target bundleno = 5 (0x5), region = 91 }
 0x1ab   :  { %522 = vsyncpa [#allocation3], 1 }
 0x1ac   :  { %524 = vsyncpa [#allocation3 + $0x1], 1 }
 0x1ad   :  { %525 = vsyncpa [#allocation5], 1 }
 0x1ae   :  { %527 = vsyncpa [#allocation5 + $0x1], 1 }

</bundles_post_ra>
